<compile_context>
chip_gen: v6e
topology: v6e:2x2x1
jax: 0.10.0
libtpu: 0.0.40
codegen_flags: <defaults>
</compile_context>

<pallas_src>
import jax
import jax.numpy as jnp
from jax.experimental import pallas as pl
from jax.experimental.pallas import tpu as pltpu


def _edge_dot_kernel(src_ref, dst_ref, o_ref):
    # src_ref, dst_ref : (TILE_E, H)  gathered feature blocks (edge-major).
    # o_ref            : (1, TILE_E)  lane-dense per-edge dot products.
    prod = src_ref[...].astype(jnp.float32) * dst_ref[...].astype(jnp.float32)
    # Transpose rides the XLU slot (idle in this HBM-bound kernel); the
    # reduction then runs over sublanes and the store is a single unmasked,
    # lane-dense (1, TILE_E) block.
    o_ref[...] = jnp.sum(prod.T, axis=0, keepdims=True)


def classifier_forward(x_src_all, x_dst_all, edge_label_index, tile_e=8192):
    """Pallas equivalent of Classifier.forward.

    x_src_all: [N_src, H] embeddings of the source node type
    x_dst_all: [N_dst, H] embeddings of the destination node type
    edge_label_index: [2, E] integer indices (row 0 = src, row 1 = dst)
    returns: [E] float32
    """
    H = x_src_all.shape[-1]
    E = edge_label_index.shape[-1]
    src_idx = edge_label_index[0].astype(jnp.int32)
    dst_idx = edge_label_index[1].astype(jnp.int32)

    # Row gather in the wrapper: XLA's row gather is DMA-efficient.  No
    # transpose and no pad here -- both would materialize an extra full HBM
    # copy of the gathered features that cannot fuse across the pallas_call
    # boundary.  (Note: jnp.take clamps out-of-bounds indices instead of
    # raising like PyTorch advanced indexing.)
    x_src = jnp.take(x_src_all, src_idx, axis=0)   # (E, H)
    x_dst = jnp.take(x_dst_all, dst_idx, axis=0)   # (E, H)

    # --- tile-size selection & VMEM budget -----------------------------------
    # VMEM stores blocks with the minor dim padded to 128 lanes, so budget with
    # the padded width: 2 inputs x 2 pipeline buffers x tile x lanes x itemsize.
    itemsize = jnp.dtype(x_src.dtype).itemsize
    lanes = max(128, ((H + 127) // 128) * 128)
    vmem_budget = 32 * 1024 * 1024                 # safe on v5e / v6e / v7x
    tile = max(128, (int(tile_e) // 128) * 128)
    while tile > 128 and 4 * tile * lanes * itemsize > vmem_budget:
        tile //= 2
    tile = max(128, (tile // 128) * 128)

    if E <= tile:
        tile = E                                   # single full-array block
    grid = pl.cdiv(E, tile)                        # ragged last block is fine

    vmem_need = 4 * tile * lanes * itemsize + 2 * 8 * tile * 4 + (2 << 20)
    vmem_limit = int(min(max(vmem_need, 8 << 20), 40 << 20))

    out = pl.pallas_call(
        _edge_dot_kernel,
        out_shape=jax.ShapeDtypeStruct((1, E), jnp.float32),
        grid_spec=pl.GridSpec(
            grid=(grid,),
            in_specs=[
                pl.BlockSpec((tile, H), lambda t: (t, 0)),
                pl.BlockSpec((tile, H), lambda t: (t, 0)),
            ],
            out_specs=pl.BlockSpec((1, tile), lambda t: (0, t)),
        ),
        compiler_params=pltpu.CompilerParams(
            dimension_semantics=("parallel",),      # v7x: shard tiles over 2 TCs
            vmem_limit_bytes=vmem_limit),
    )(x_src, x_dst)

    return out[0]


if __name__ == "__main__":
    key = jax.random.PRNGKey(0)
    k1, k2, k3, k4 = jax.random.split(key, 4)

    num_src, num_dst, hidden, num_edges = 16, 12, 32, 8

    # Deterministic "x_dict" entries for the two node types of link_type.
    x_src_all = jax.random.normal(k1, (num_src, hidden), dtype=jnp.float32)
    x_dst_all = jax.random.normal(k2, (num_dst, hidden), dtype=jnp.float32)

    # Deterministic edge_label_index: [2, E]
    src_ids = jax.random.randint(k3, (num_edges,), 0, num_src, dtype=jnp.int32)
    dst_ids = jax.random.randint(k4, (num_edges,), 0, num_dst, dtype=jnp.int32)
    edge_label_index = jnp.stack([src_ids, dst_ids], axis=0)

    out = classifier_forward(x_src_all, x_dst_all, edge_label_index)
    out = jax.block_until_ready(out)

    ref = jnp.sum(x_src_all[src_ids] * x_dst_all[dst_ids], axis=-1)
    assert out.shape == (num_edges,)
    assert jnp.allclose(out, ref, atol=1e-5, rtol=1e-5), (out, ref)

    # Second case: exercise the multi-tile grid with a ragged last block
    # (E = 300 edges with a forced 128-edge tile -> grid of 3, last block short).
    k5, k6 = jax.random.split(k4)
    num_edges2 = 300
    src_ids2 = jax.random.randint(k5, (num_edges2,), 0, num_src, dtype=jnp.int32)
    dst_ids2 = jax.random.randint(k6, (num_edges2,), 0, num_dst, dtype=jnp.int32)
    eli2 = jnp.stack([src_ids2, dst_ids2], axis=0)

    out2 = classifier_forward(x_src_all, x_dst_all, eli2, tile_e=128)
    out2 = jax.block_until_ready(out2)
    ref2 = jnp.sum(x_src_all[src_ids2] * x_dst_all[dst_ids2], axis=-1)
    assert out2.shape == (num_edges2,)
    assert jnp.allclose(out2, ref2, atol=1e-5, rtol=1e-5)

    print("KERNEL_OK")
</pallas_src>

<mosaic_0001>
module attributes {stable_mosaic.version = 11 : i64} {
  func.func @_edge_dot_kernel(%arg0: i32, %arg1: memref<8x32xf32, #tpu.memory_space<vmem>>, %arg2: memref<8x32xf32, #tpu.memory_space<vmem>>, %arg3: memref<1x8xf32, #tpu.memory_space<vmem>>) attributes {dimension_semantics = [#tpu.dimension_semantics<parallel>], iteration_bounds = array<i64: 1>, scalar_prefetch = 0 : i64, scratch_operands = 0 : i64, tpu.core_type = #tpu.core_type<tc>, window_params = [{transform_indices = @transform_0, window_bounds = array<i64: 8, 32>}, {transform_indices = @transform_1, window_bounds = array<i64: 8, 32>}, {transform_indices = @transform_2, window_bounds = array<i64: 1, 8>}]} {
    %c0 = arith.constant 0 : index
    %c0_0 = arith.constant 0 : index
    %0 = vector.load %arg1[%c0, %c0_0] : memref<8x32xf32, #tpu.memory_space<vmem>>, vector<8x32xf32>
    %c0_1 = arith.constant 0 : index
    %c0_2 = arith.constant 0 : index
    %1 = vector.load %arg2[%c0_1, %c0_2] : memref<8x32xf32, #tpu.memory_space<vmem>>, vector<8x32xf32>
    %2 = arith.mulf %0, %1 : vector<8x32xf32>
    %3 = tpu.transpose %2, [1, 0] : vector<8x32xf32> -> vector<32x8xf32>
    %cst = arith.constant dense<0.000000e+00> : vector<8xf32>
    %4 = vector.multi_reduction <add>, %3, %cst [0] : vector<32x8xf32> to vector<8xf32>
    %5 = vector.shape_cast %4 : vector<8xf32> to vector<1x8xf32>
    %c0_3 = arith.constant 0 : index
    %c0_4 = arith.constant 0 : index
    %6 = vector.load %arg3[%c0_3, %c0_4] : memref<1x8xf32, #tpu.memory_space<vmem>>, vector<1x8xf32>
    tpu.vector_store %arg3[%c0_3, %c0_4], %5 {strides = array<i32>} : memref<1x8xf32, #tpu.memory_space<vmem>>, vector<1x8xf32>,
    return
  }
  func.func @transform_0(%arg0: i32) -> (i32, i32) {
    %c0_i32 = arith.constant 0 : i32
    %c0_i32_0 = arith.constant 0 : i32
    return %arg0, %c0_i32 : i32, i32
  }
  func.func @transform_1(%arg0: i32) -> (i32, i32) {
    %c0_i32 = arith.constant 0 : i32
    %c0_i32_0 = arith.constant 0 : i32
    return %arg0, %c0_i32 : i32, i32
  }
  func.func @transform_2(%arg0: i32) -> (i32, i32) {
    %c0_i32 = arith.constant 0 : i32
    %c0_i32_0 = arith.constant 0 : i32
    return %c0_i32, %arg0 : i32, i32
  }
}

</mosaic_0001>

<bundles_post_ra>
// kernel: tpu_custom_call.1
= control target key start
LH: loop header
LB: loop body
LE: loop exit
PB: predicated region body
PF: predicated region fallthrough
CT: control target
= control target key end

     0   :  { %7 = vsyncpa [#allocation3], 0  ;;  %s200_s0 = inlined_call_operand.hbm [shape: f32[8,32], index: 0, kind: input, shape index: {}]   ;;  %s201_s1 = inlined_call_operand.hbm [shape: f32[8,32], index: 1, kind: input, shape index: {}]   ;;  %s202_s2 = inlined_call_operand.hbm [shape: f32[1,8], index: 2, kind: output, shape index: {}]  }
   0x1   :  { %8 = vsyncpa [#allocation6], 0 }
   0x2   :  { %9 = vsyncpa [#allocation4], 0  ;;  %s173_s9 = smov [#allocation2]   ;;  %s174_s11 = smov [#allocation5]  }
   0x3   :  { %s16_s10 = sshll.u32 %s173_s9, 4  ;;  %s26_s12 = sshll.u32 %s174_s11, 4  ;;  %s17_s10 = int_to_ptr.vmem [resolvable:$true] %s16_s10  ;;  %s27_s12 = int_to_ptr.vmem [resolvable:$true] %s26_s12 }
   0x4   :  { %s115_s13 = scalar_lea.vmem %s17_s10, 128  ;;  %p120_p1 = scmp.lt.s32.totalorder %s17_s10, %s17_s10 }
   0x5   :  { %p116_p0 = scmp.ne.s32.totalorder %s17_s10, %s115_s13  ;;  %p121_p2 = scmp.lt.s32.totalorder %s115_s13, %s115_s13 }
   0x7   :  { %p122_p3 = por %p121_p2, %p120_p1 }
   0x9   :  { %p123_p4 = pnand %p122_p3, %p116_p0 }
   0xb   :  { %126 = shalt.err (!%p123_p4)
}
   0xc   :  { %19 = dma.hbm_to_vmem [thread:$0]  %s200_s0, 128, %s17_s10, [#allocation3]  }
   0xd   :  { %s135_s16 = scalar_lea.vmem %s27_s12, 128  ;;  %p140_p6 = scmp.lt.s32.totalorder %s27_s12, %s27_s12 }
   0xe   :  { %p136_p5 = scmp.ne.s32.totalorder %s27_s12, %s135_s16  ;;  %p141_p7 = scmp.lt.s32.totalorder %s135_s16, %s135_s16 }
  0x10   :  { %p142_p8 = por %p141_p7, %p140_p6 }
  0x12   :  { %p143_p9 = pnand %p142_p8, %p136_p5 }
  0x14   :  { %146 = shalt.err (!%p143_p9)
}
  0x15   :  { %29 = dma.hbm_to_vmem [thread:$0]  %s201_s1, 128, %s27_s12, [#allocation6]  }
  0x16   :  { %167 = dma.done.wait [#allocation3], 128  }
  0x17   :  { %168 = vsyncadd [#allocation3], 4294967168 }
  0x18   :  { %169 = dma.done.wait [#allocation6], 128  }
  0x19   :  { %170 = vsyncadd [#allocation6], 4294967168  ;;  %v36_v0 = vld [vmem:[#allocation2] sm:$0xff]  ;;  %v37_v1 = vld [vmem:[#allocation5] sm:$0xff]  ;;  %vm71_vm0 = vcmask 64512   ;;  %s175_s0 = smov [#allocation7]  }
  0x1a   :  { %v38_v2 = vmul.f32 %v37_v1, %v36_v0  ;;  %s93_s1 = sshll.u32 %s175_s0, 4  ;;  %vm85_vm1 = vcmask 57344   ;;  %s94_s1 = int_to_ptr.vmem [resolvable:$true] %s93_s1 }
  0x1b   :  { %s147_s19 = scalar_lea.vmem %s94_s1, 16  ;;  %s151_s20 = scalar_lea.vmem %s94_s1, 32 }
  0x1c   :  { %39 = vxpose.xlu0.b32.start.end [1/1] (short) (narrow) %v38_v2, 32  ;;  %p148_p10 = scmp.ne.s32.totalorder %s94_s1, %s147_s19  ;;  %p152_p11 = scmp.lt.s32.totalorder %s94_s1, %s94_s1 }
  0x1d   :  { %p153_p12 = scmp.lt.s32.totalorder %s151_s20, %s147_s19 }
  0x1f   :  { %p154_p13 = por %p153_p12, %p152_p11 }
  0x21   :  { %p155_p0 = pnand %p154_p13, %p148_p10 }
  0x98   :  { %v55_v3 = vpop.trf.xlu0 }
  0x99   :  { %v72_v7 = vsel %vm71_vm0, %v55_v3, 0.0 }
  0x9c   :  { %v56_v4 = vpop.trf.xlu0 }
  0x9d   :  { %v73_v5 = vsel %vm71_vm0, %v56_v4, 0.0 }
  0x9e   :  { %v74_v9 = vadd.f32 %v73_v5, %v72_v7 }
  0xa0   :  { %v57_v6 = vpop.trf.xlu0 }
  0xa1   :  { %v75_v8 = vsel %vm71_vm0, %v57_v6, 0.0 }
  0xa2   :  { %v76_v10 = vadd.f32 %v75_v8, %v74_v9 }
  0xa4   :  { %v58_v11 = vpop.trf.xlu0 }
  0xa5   :  { %v77_v12 = vsel %vm71_vm0, %v58_v11, 0.0 }
  0xa6   :  { %v78_v13 = vadd.f32 %v77_v12, %v76_v10 }
  0xa8   :  { %v79_v14 = vrot.slane %v78_v13, 4 }
  0xaa   :  { %v80_v15 = vadd.f32 %v79_v14, %v78_v13 }
  0xac   :  { %v81_v16 = vrot.slane %v80_v15, 2 }
  0xae   :  { %v82_v17 = vadd.f32 %v81_v16, %v80_v15 }
  0xb0   :  { %v83_v18 = vrot.slane %v82_v17, 1 }
  0xb2   :  { %v84_v19 = vadd.f32 %v83_v18, %v82_v17 }
  0xb4   :  { %86 = vst.msk [vmem:[#allocation7] sm:$0x1] %vm85_vm1, %v84_v19 }
  0xb5   :  { %158 = shalt.err (!%p155_p0)
}
  0xb6   :  { %96 = dma.vmem_to_hbm [thread:$0]  %s94_s1, 16, %s202_s2, [#allocation4]  }
  0xb7   :  { %171 = dma.done.wait [#allocation4], 16  }
  0xb8   :  { %172 = vsyncadd [#allocation4], 4294967280 }
  0xb9   :  { %100 = vsyncpa [#allocation3], 1 }
  0xba   :  { %101 = vsyncpa [#allocation6], 1 }
  0xbb   :  { %102 = vsyncpa [#allocation4], 1 }

</bundles_post_ra>
